<compile_context>
chip_gen: v6e
topology: v6e:2x2x1
jax: 0.10.0
libtpu: 0.0.40
codegen_flags: <defaults>
</compile_context>

<pallas_src>
import functools

import jax
import jax.numpy as jnp
from jax.experimental import pallas as pl
from jax.experimental.pallas import tpu as pltpu

EPS = 1e-5
K = 2  # conv kernel size (2x2), stride 1, no padding


def model_kernel(x_ref, p_ref, o_ref, *, n_batch, n_chan):
    """x_ref: (N*C, H, W) f32 VMEM
       p_ref: (40,) f32 SMEM -- [w1(16) | b1(2) | w2(16) | b2(2) | gamma(2) | beta(2)]
       o_ref: (N*C, H2, W2) f32 VMEM
    """
    N, C = n_batch, n_chan
    NC, H, W = x_ref.shape
    H1, W1 = H - K + 1, W - K + 1
    H2, W2 = H1 - K + 1, W1 - K + 1

    # Flat-parameter offsets (static Python ints -> cheap SMEM scalar loads).
    wsz = C * C * K * K
    off_w1 = 0
    off_b1 = wsz
    off_w2 = wsz + C
    off_b2 = off_w2 + wsz
    off_gamma = off_b2 + C
    off_beta = off_b2 + 2 * C

    def wread(base, co, ci, kh, kw):
        return p_ref[base + ((co * C + ci) * K + kh) * K + kw]

    # Load each input channel slab from VMEM exactly once.
    xs = [x_ref[i] for i in range(NC)]

    def conv(chans, base_w, hin, win, bias_off=None):
        """chans: flat list of (hin, win) slabs indexed [n*C + ci].
        Returns flat list of (hout, wout) slabs indexed [n*C + co]."""
        hout, wout = hin - K + 1, win - K + 1
        out = []
        for n in range(N):
            for co in range(C):
                acc = None  # init with first product (no zeros+bias broadcast)
                for ci in range(C):
                    s = chans[n * C + ci]
                    for kh in range(K):
                        for kw in range(K):
                            t = s[kh:kh + hout, kw:kw + wout] * wread(base_w, co, ci, kh, kw)
                            acc = t if acc is None else acc + t
                if bias_off is not None:
                    acc = acc + p_ref[bias_off + co]
                out.append(acc)
        return out

    y1 = conv(xs, off_w1, H, W, bias_off=off_b1)
    # conv2 bias dropped: a per-channel constant cancels exactly under the
    # training-mode BatchNorm mean subtraction that follows.
    y2 = conv(y1, off_w2, H1, W1, bias_off=None)

    # BatchNorm2d (training-mode batch statistics, biased variance),
    # single pass: var = E[x^2] - E[x]^2.
    inv_cnt = 1.0 / float(N * H2 * W2)
    for co in range(C):
        s = None
        ss = None
        for n in range(N):
            v = y2[n * C + co]
            s = jnp.sum(v) if s is None else s + jnp.sum(v)
            ss = jnp.sum(v * v) if ss is None else ss + jnp.sum(v * v)
        mean = s * inv_cnt
        var = ss * inv_cnt - mean * mean
        scale = jax.lax.rsqrt(var + EPS) * p_ref[off_gamma + co]
        shift = p_ref[off_beta + co] - mean * scale
        for n in range(N):
            # Direct per-channel store (no jnp.stack relayout).
            o_ref[n * C + co, :, :] = y2[n * C + co] * scale + shift


def model_forward(x, w1, b1, w2, b2, gamma, beta):
    N, C, H, W = x.shape
    H2, W2 = H - 2 * (K - 1), W - 2 * (K - 1)

    # Pack every parameter into one flat f32 array; delivered via SMEM in a
    # single transfer and read as scalars inside the kernel.
    params = jnp.concatenate([
        w1.reshape(-1), b1.reshape(-1),
        w2.reshape(-1), b2.reshape(-1),
        gamma.reshape(-1), beta.reshape(-1),
    ]).astype(jnp.float32)

    out = pl.pallas_call(
        functools.partial(model_kernel, n_batch=N, n_chan=C),
        out_shape=jax.ShapeDtypeStruct((N * C, H2, W2), jnp.float32),
        in_specs=[
            pl.BlockSpec(memory_space=pltpu.MemorySpace.VMEM),
            pl.BlockSpec(memory_space=pltpu.MemorySpace.SMEM),
        ],
        out_specs=pl.BlockSpec(memory_space=pltpu.MemorySpace.VMEM),
    )(x.reshape(N * C, H, W).astype(jnp.float32), params)

    return out.reshape(N, C, H2, W2)


if __name__ == "__main__":
    key = jax.random.PRNGKey(0)
    kx, kw1, kb1, kw2, kb2 = jax.random.split(key, 5)

    N, C, H, W = 1, 2, 8, 8
    x = jax.random.normal(kx, (N, C, H, W), jnp.float32)

    # Deterministic parameter init (uniform in +-1/sqrt(fan_in), PyTorch-style bound).
    fan_in = C * K * K
    bound = 1.0 / (fan_in ** 0.5)
    w1 = jax.random.uniform(kw1, (C, C, K, K), jnp.float32, -bound, bound)
    b1 = jax.random.uniform(kb1, (C,), jnp.float32, -bound, bound)
    w2 = jax.random.uniform(kw2, (C, C, K, K), jnp.float32, -bound, bound)
    b2 = jax.random.uniform(kb2, (C,), jnp.float32, -bound, bound)
    gamma = jnp.ones((C,), jnp.float32)   # BatchNorm2d affine defaults
    beta = jnp.zeros((C,), jnp.float32)

    out = model_forward(x, w1, b1, w2, b2, gamma, beta)
    out = jax.block_until_ready(out)
    assert out.shape == (N, C, H - 2, W - 2), out.shape
    assert bool(jnp.all(jnp.isfinite(out)))
    print("KERNEL_OK")
</pallas_src>

<mosaic_0001>
module attributes {stable_mosaic.version = 11 : i64} {
  func.func @model_kernel(%arg0: memref<2x8x8xf32, #tpu.memory_space<vmem>>, %arg1: memref<40xf32, #tpu.memory_space<smem>>, %arg2: memref<2x6x6xf32, #tpu.memory_space<vmem>>) attributes {dimension_semantics = [], scalar_prefetch = 0 : i64, scratch_operands = 0 : i64, tpu.core_type = #tpu.core_type<tc>} {
    %c0 = arith.constant 0 : index
    %c0_0 = arith.constant 0 : index
    %c0_1 = arith.constant 0 : index
    %0 = vector.load %arg0[%c0, %c0_0, %c0_1] : memref<2x8x8xf32, #tpu.memory_space<vmem>>, vector<1x8x8xf32>
    %1 = vector.shape_cast %0 : vector<1x8x8xf32> to vector<8x8xf32>
    %c1 = arith.constant 1 : index
    %c0_2 = arith.constant 0 : index
    %c0_3 = arith.constant 0 : index
    %2 = vector.load %arg0[%c1, %c0_2, %c0_3] : memref<2x8x8xf32, #tpu.memory_space<vmem>>, vector<1x8x8xf32>
    %3 = vector.shape_cast %2 : vector<1x8x8xf32> to vector<8x8xf32>
    %4 = vector.extract_strided_slice %1 {offsets = [0, 0], sizes = [7, 7], strides = [1, 1]} : vector<8x8xf32> to vector<7x7xf32>
    %c0_4 = arith.constant 0 : index
    %5 = memref.load %arg1[%c0_4] : memref<40xf32, #tpu.memory_space<smem>>
    %6 = vector.broadcast %5 : f32 to vector<7x7xf32>
    %7 = arith.mulf %4, %6 : vector<7x7xf32>
    %8 = vector.extract_strided_slice %1 {offsets = [0, 1], sizes = [7, 7], strides = [1, 1]} : vector<8x8xf32> to vector<7x7xf32>
    %c1_5 = arith.constant 1 : index
    %9 = memref.load %arg1[%c1_5] : memref<40xf32, #tpu.memory_space<smem>>
    %10 = vector.broadcast %9 : f32 to vector<7x7xf32>
    %11 = arith.mulf %8, %10 : vector<7x7xf32>
    %12 = arith.addf %7, %11 : vector<7x7xf32>
    %13 = vector.extract_strided_slice %1 {offsets = [1, 0], sizes = [7, 7], strides = [1, 1]} : vector<8x8xf32> to vector<7x7xf32>
    %c2 = arith.constant 2 : index
    %14 = memref.load %arg1[%c2] : memref<40xf32, #tpu.memory_space<smem>>
    %15 = vector.broadcast %14 : f32 to vector<7x7xf32>
    %16 = arith.mulf %13, %15 : vector<7x7xf32>
    %17 = arith.addf %12, %16 : vector<7x7xf32>
    %18 = vector.extract_strided_slice %1 {offsets = [1, 1], sizes = [7, 7], strides = [1, 1]} : vector<8x8xf32> to vector<7x7xf32>
    %c3 = arith.constant 3 : index
    %19 = memref.load %arg1[%c3] : memref<40xf32, #tpu.memory_space<smem>>
    %20 = vector.broadcast %19 : f32 to vector<7x7xf32>
    %21 = arith.mulf %18, %20 : vector<7x7xf32>
    %22 = arith.addf %17, %21 : vector<7x7xf32>
    %23 = vector.extract_strided_slice %3 {offsets = [0, 0], sizes = [7, 7], strides = [1, 1]} : vector<8x8xf32> to vector<7x7xf32>
    %c4 = arith.constant 4 : index
    %24 = memref.load %arg1[%c4] : memref<40xf32, #tpu.memory_space<smem>>
    %25 = vector.broadcast %24 : f32 to vector<7x7xf32>
    %26 = arith.mulf %23, %25 : vector<7x7xf32>
    %27 = arith.addf %22, %26 : vector<7x7xf32>
    %28 = vector.extract_strided_slice %3 {offsets = [0, 1], sizes = [7, 7], strides = [1, 1]} : vector<8x8xf32> to vector<7x7xf32>
    %c5 = arith.constant 5 : index
    %29 = memref.load %arg1[%c5] : memref<40xf32, #tpu.memory_space<smem>>
    %30 = vector.broadcast %29 : f32 to vector<7x7xf32>
    %31 = arith.mulf %28, %30 : vector<7x7xf32>
    %32 = arith.addf %27, %31 : vector<7x7xf32>
    %33 = vector.extract_strided_slice %3 {offsets = [1, 0], sizes = [7, 7], strides = [1, 1]} : vector<8x8xf32> to vector<7x7xf32>
    %c6 = arith.constant 6 : index
    %34 = memref.load %arg1[%c6] : memref<40xf32, #tpu.memory_space<smem>>
    %35 = vector.broadcast %34 : f32 to vector<7x7xf32>
    %36 = arith.mulf %33, %35 : vector<7x7xf32>
    %37 = arith.addf %32, %36 : vector<7x7xf32>
    %38 = vector.extract_strided_slice %3 {offsets = [1, 1], sizes = [7, 7], strides = [1, 1]} : vector<8x8xf32> to vector<7x7xf32>
    %c7 = arith.constant 7 : index
    %39 = memref.load %arg1[%c7] : memref<40xf32, #tpu.memory_space<smem>>
    %40 = vector.broadcast %39 : f32 to vector<7x7xf32>
    %41 = arith.mulf %38, %40 : vector<7x7xf32>
    %42 = arith.addf %37, %41 : vector<7x7xf32>
    %c16 = arith.constant 16 : index
    %43 = memref.load %arg1[%c16] : memref<40xf32, #tpu.memory_space<smem>>
    %44 = vector.broadcast %43 : f32 to vector<7x7xf32>
    %45 = arith.addf %42, %44 : vector<7x7xf32>
    %46 = vector.extract_strided_slice %1 {offsets = [0, 0], sizes = [7, 7], strides = [1, 1]} : vector<8x8xf32> to vector<7x7xf32>
    %c8 = arith.constant 8 : index
    %47 = memref.load %arg1[%c8] : memref<40xf32, #tpu.memory_space<smem>>
    %48 = vector.broadcast %47 : f32 to vector<7x7xf32>
    %49 = arith.mulf %46, %48 : vector<7x7xf32>
    %50 = vector.extract_strided_slice %1 {offsets = [0, 1], sizes = [7, 7], strides = [1, 1]} : vector<8x8xf32> to vector<7x7xf32>
    %c9 = arith.constant 9 : index
    %51 = memref.load %arg1[%c9] : memref<40xf32, #tpu.memory_space<smem>>
    %52 = vector.broadcast %51 : f32 to vector<7x7xf32>
    %53 = arith.mulf %50, %52 : vector<7x7xf32>
    %54 = arith.addf %49, %53 : vector<7x7xf32>
    %55 = vector.extract_strided_slice %1 {offsets = [1, 0], sizes = [7, 7], strides = [1, 1]} : vector<8x8xf32> to vector<7x7xf32>
    %c10 = arith.constant 10 : index
    %56 = memref.load %arg1[%c10] : memref<40xf32, #tpu.memory_space<smem>>
    %57 = vector.broadcast %56 : f32 to vector<7x7xf32>
    %58 = arith.mulf %55, %57 : vector<7x7xf32>
    %59 = arith.addf %54, %58 : vector<7x7xf32>
    %60 = vector.extract_strided_slice %1 {offsets = [1, 1], sizes = [7, 7], strides = [1, 1]} : vector<8x8xf32> to vector<7x7xf32>
    %c11 = arith.constant 11 : index
    %61 = memref.load %arg1[%c11] : memref<40xf32, #tpu.memory_space<smem>>
    %62 = vector.broadcast %61 : f32 to vector<7x7xf32>
    %63 = arith.mulf %60, %62 : vector<7x7xf32>
    %64 = arith.addf %59, %63 : vector<7x7xf32>
    %65 = vector.extract_strided_slice %3 {offsets = [0, 0], sizes = [7, 7], strides = [1, 1]} : vector<8x8xf32> to vector<7x7xf32>
    %c12 = arith.constant 12 : index
    %66 = memref.load %arg1[%c12] : memref<40xf32, #tpu.memory_space<smem>>
    %67 = vector.broadcast %66 : f32 to vector<7x7xf32>
    %68 = arith.mulf %65, %67 : vector<7x7xf32>
    %69 = arith.addf %64, %68 : vector<7x7xf32>
    %70 = vector.extract_strided_slice %3 {offsets = [0, 1], sizes = [7, 7], strides = [1, 1]} : vector<8x8xf32> to vector<7x7xf32>
    %c13 = arith.constant 13 : index
    %71 = memref.load %arg1[%c13] : memref<40xf32, #tpu.memory_space<smem>>
    %72 = vector.broadcast %71 : f32 to vector<7x7xf32>
    %73 = arith.mulf %70, %72 : vector<7x7xf32>
    %74 = arith.addf %69, %73 : vector<7x7xf32>
    %75 = vector.extract_strided_slice %3 {offsets = [1, 0], sizes = [7, 7], strides = [1, 1]} : vector<8x8xf32> to vector<7x7xf32>
    %c14 = arith.constant 14 : index
    %76 = memref.load %arg1[%c14] : memref<40xf32, #tpu.memory_space<smem>>
    %77 = vector.broadcast %76 : f32 to vector<7x7xf32>
    %78 = arith.mulf %75, %77 : vector<7x7xf32>
    %79 = arith.addf %74, %78 : vector<7x7xf32>
    %80 = vector.extract_strided_slice %3 {offsets = [1, 1], sizes = [7, 7], strides = [1, 1]} : vector<8x8xf32> to vector<7x7xf32>
    %c15 = arith.constant 15 : index
    %81 = memref.load %arg1[%c15] : memref<40xf32, #tpu.memory_space<smem>>
    %82 = vector.broadcast %81 : f32 to vector<7x7xf32>
    %83 = arith.mulf %80, %82 : vector<7x7xf32>
    %84 = arith.addf %79, %83 : vector<7x7xf32>
    %c17 = arith.constant 17 : index
    %85 = memref.load %arg1[%c17] : memref<40xf32, #tpu.memory_space<smem>>
    %86 = vector.broadcast %85 : f32 to vector<7x7xf32>
    %87 = arith.addf %84, %86 : vector<7x7xf32>
    %88 = vector.extract_strided_slice %45 {offsets = [0, 0], sizes = [6, 6], strides = [1, 1]} : vector<7x7xf32> to vector<6x6xf32>
    %c18 = arith.constant 18 : index
    %89 = memref.load %arg1[%c18] : memref<40xf32, #tpu.memory_space<smem>>
    %90 = vector.broadcast %89 : f32 to vector<6x6xf32>
    %91 = arith.mulf %88, %90 : vector<6x6xf32>
    %92 = vector.extract_strided_slice %45 {offsets = [0, 1], sizes = [6, 6], strides = [1, 1]} : vector<7x7xf32> to vector<6x6xf32>
    %c19 = arith.constant 19 : index
    %93 = memref.load %arg1[%c19] : memref<40xf32, #tpu.memory_space<smem>>
    %94 = vector.broadcast %93 : f32 to vector<6x6xf32>
    %95 = arith.mulf %92, %94 : vector<6x6xf32>
    %96 = arith.addf %91, %95 : vector<6x6xf32>
    %97 = vector.extract_strided_slice %45 {offsets = [1, 0], sizes = [6, 6], strides = [1, 1]} : vector<7x7xf32> to vector<6x6xf32>
    %c20 = arith.constant 20 : index
    %98 = memref.load %arg1[%c20] : memref<40xf32, #tpu.memory_space<smem>>
    %99 = vector.broadcast %98 : f32 to vector<6x6xf32>
    %100 = arith.mulf %97, %99 : vector<6x6xf32>
    %101 = arith.addf %96, %100 : vector<6x6xf32>
    %102 = vector.extract_strided_slice %45 {offsets = [1, 1], sizes = [6, 6], strides = [1, 1]} : vector<7x7xf32> to vector<6x6xf32>
    %c21 = arith.constant 21 : index
    %103 = memref.load %arg1[%c21] : memref<40xf32, #tpu.memory_space<smem>>
    %104 = vector.broadcast %103 : f32 to vector<6x6xf32>
    %105 = arith.mulf %102, %104 : vector<6x6xf32>
    %106 = arith.addf %101, %105 : vector<6x6xf32>
    %107 = vector.extract_strided_slice %87 {offsets = [0, 0], sizes = [6, 6], strides = [1, 1]} : vector<7x7xf32> to vector<6x6xf32>
    %c22 = arith.constant 22 : index
    %108 = memref.load %arg1[%c22] : memref<40xf32, #tpu.memory_space<smem>>
    %109 = vector.broadcast %108 : f32 to vector<6x6xf32>
    %110 = arith.mulf %107, %109 : vector<6x6xf32>
    %111 = arith.addf %106, %110 : vector<6x6xf32>
    %112 = vector.extract_strided_slice %87 {offsets = [0, 1], sizes = [6, 6], strides = [1, 1]} : vector<7x7xf32> to vector<6x6xf32>
    %c23 = arith.constant 23 : index
    %113 = memref.load %arg1[%c23] : memref<40xf32, #tpu.memory_space<smem>>
    %114 = vector.broadcast %113 : f32 to vector<6x6xf32>
    %115 = arith.mulf %112, %114 : vector<6x6xf32>
    %116 = arith.addf %111, %115 : vector<6x6xf32>
    %117 = vector.extract_strided_slice %87 {offsets = [1, 0], sizes = [6, 6], strides = [1, 1]} : vector<7x7xf32> to vector<6x6xf32>
    %c24 = arith.constant 24 : index
    %118 = memref.load %arg1[%c24] : memref<40xf32, #tpu.memory_space<smem>>
    %119 = vector.broadcast %118 : f32 to vector<6x6xf32>
    %120 = arith.mulf %117, %119 : vector<6x6xf32>
    %121 = arith.addf %116, %120 : vector<6x6xf32>
    %122 = vector.extract_strided_slice %87 {offsets = [1, 1], sizes = [6, 6], strides = [1, 1]} : vector<7x7xf32> to vector<6x6xf32>
    %c25 = arith.constant 25 : index
    %123 = memref.load %arg1[%c25] : memref<40xf32, #tpu.memory_space<smem>>
    %124 = vector.broadcast %123 : f32 to vector<6x6xf32>
    %125 = arith.mulf %122, %124 : vector<6x6xf32>
    %126 = arith.addf %121, %125 : vector<6x6xf32>
    %127 = vector.extract_strided_slice %45 {offsets = [0, 0], sizes = [6, 6], strides = [1, 1]} : vector<7x7xf32> to vector<6x6xf32>
    %c26 = arith.constant 26 : index
    %128 = memref.load %arg1[%c26] : memref<40xf32, #tpu.memory_space<smem>>
    %129 = vector.broadcast %128 : f32 to vector<6x6xf32>
    %130 = arith.mulf %127, %129 : vector<6x6xf32>
    %131 = vector.extract_strided_slice %45 {offsets = [0, 1], sizes = [6, 6], strides = [1, 1]} : vector<7x7xf32> to vector<6x6xf32>
    %c27 = arith.constant 27 : index
    %132 = memref.load %arg1[%c27] : memref<40xf32, #tpu.memory_space<smem>>
    %133 = vector.broadcast %132 : f32 to vector<6x6xf32>
    %134 = arith.mulf %131, %133 : vector<6x6xf32>
    %135 = arith.addf %130, %134 : vector<6x6xf32>
    %136 = vector.extract_strided_slice %45 {offsets = [1, 0], sizes = [6, 6], strides = [1, 1]} : vector<7x7xf32> to vector<6x6xf32>
    %c28 = arith.constant 28 : index
    %137 = memref.load %arg1[%c28] : memref<40xf32, #tpu.memory_space<smem>>
    %138 = vector.broadcast %137 : f32 to vector<6x6xf32>
    %139 = arith.mulf %136, %138 : vector<6x6xf32>
    %140 = arith.addf %135, %139 : vector<6x6xf32>
    %141 = vector.extract_strided_slice %45 {offsets = [1, 1], sizes = [6, 6], strides = [1, 1]} : vector<7x7xf32> to vector<6x6xf32>
    %c29 = arith.constant 29 : index
    %142 = memref.load %arg1[%c29] : memref<40xf32, #tpu.memory_space<smem>>
    %143 = vector.broadcast %142 : f32 to vector<6x6xf32>
    %144 = arith.mulf %141, %143 : vector<6x6xf32>
    %145 = arith.addf %140, %144 : vector<6x6xf32>
    %146 = vector.extract_strided_slice %87 {offsets = [0, 0], sizes = [6, 6], strides = [1, 1]} : vector<7x7xf32> to vector<6x6xf32>
    %c30 = arith.constant 30 : index
    %147 = memref.load %arg1[%c30] : memref<40xf32, #tpu.memory_space<smem>>
    %148 = vector.broadcast %147 : f32 to vector<6x6xf32>
    %149 = arith.mulf %146, %148 : vector<6x6xf32>
    %150 = arith.addf %145, %149 : vector<6x6xf32>
    %151 = vector.extract_strided_slice %87 {offsets = [0, 1], sizes = [6, 6], strides = [1, 1]} : vector<7x7xf32> to vector<6x6xf32>
    %c31 = arith.constant 31 : index
    %152 = memref.load %arg1[%c31] : memref<40xf32, #tpu.memory_space<smem>>
    %153 = vector.broadcast %152 : f32 to vector<6x6xf32>
    %154 = arith.mulf %151, %153 : vector<6x6xf32>
    %155 = arith.addf %150, %154 : vector<6x6xf32>
    %156 = vector.extract_strided_slice %87 {offsets = [1, 0], sizes = [6, 6], strides = [1, 1]} : vector<7x7xf32> to vector<6x6xf32>
    %c32 = arith.constant 32 : index
    %157 = memref.load %arg1[%c32] : memref<40xf32, #tpu.memory_space<smem>>
    %158 = vector.broadcast %157 : f32 to vector<6x6xf32>
    %159 = arith.mulf %156, %158 : vector<6x6xf32>
    %160 = arith.addf %155, %159 : vector<6x6xf32>
    %161 = vector.extract_strided_slice %87 {offsets = [1, 1], sizes = [6, 6], strides = [1, 1]} : vector<7x7xf32> to vector<6x6xf32>
    %c33 = arith.constant 33 : index
    %162 = memref.load %arg1[%c33] : memref<40xf32, #tpu.memory_space<smem>>
    %163 = vector.broadcast %162 : f32 to vector<6x6xf32>
    %164 = arith.mulf %161, %163 : vector<6x6xf32>
    %165 = arith.addf %160, %164 : vector<6x6xf32>
    %166 = vector.shape_cast %126 : vector<6x6xf32> to vector<1x6x6xf32>
    %cst = arith.constant dense<0.000000e+00> : vector<1xf32>
    %167 = vector.multi_reduction <add>, %166, %cst [1, 2] : vector<1x6x6xf32> to vector<1xf32>
    %168 = vector.shape_cast %167 : vector<1xf32> to vector<1x1x1xf32>
    %169 = vector.extract %168[0, 0, 0] : f32 from vector<1x1x1xf32>
    %170 = arith.mulf %126, %126 : vector<6x6xf32>
    %171 = vector.shape_cast %170 : vector<6x6xf32> to vector<1x6x6xf32>
    %cst_6 = arith.constant dense<0.000000e+00> : vector<1xf32>
    %172 = vector.multi_reduction <add>, %171, %cst_6 [1, 2] : vector<1x6x6xf32> to vector<1xf32>
    %173 = vector.shape_cast %172 : vector<1xf32> to vector<1x1x1xf32>
    %174 = vector.extract %173[0, 0, 0] : f32 from vector<1x1x1xf32>
    %cst_7 = arith.constant 0.027777778 : f32
    %175 = arith.mulf %169, %cst_7 : f32
    %cst_8 = arith.constant 0.027777778 : f32
    %176 = arith.mulf %174, %cst_8 : f32
    %177 = arith.mulf %175, %175 : f32
    %178 = arith.subf %176, %177 : f32
    %cst_9 = arith.constant 9.99999974E-6 : f32
    %179 = arith.addf %178, %cst_9 : f32
    %180 = math.rsqrt %179 : f32
    %c36 = arith.constant 36 : index
    %181 = memref.load %arg1[%c36] : memref<40xf32, #tpu.memory_space<smem>>
    %182 = arith.mulf %180, %181 : f32
    %c38 = arith.constant 38 : index
    %183 = memref.load %arg1[%c38] : memref<40xf32, #tpu.memory_space<smem>>
    %184 = arith.mulf %175, %182 : f32
    %185 = arith.subf %183, %184 : f32
    %186 = vector.broadcast %182 : f32 to vector<6x6xf32>
    %187 = arith.mulf %126, %186 : vector<6x6xf32>
    %188 = vector.broadcast %185 : f32 to vector<6x6xf32>
    %189 = arith.addf %187, %188 : vector<6x6xf32>
    %c0_10 = arith.constant 0 : index
    %c0_11 = arith.constant 0 : index
    %c0_12 = arith.constant 0 : index
    %190 = vector.load %arg2[%c0_10, %c0_11, %c0_12] : memref<2x6x6xf32, #tpu.memory_space<vmem>>, vector<1x6x6xf32>
    %191 = vector.shape_cast %190 : vector<1x6x6xf32> to vector<6x6xf32>
    %192 = vector.shape_cast %189 : vector<6x6xf32> to vector<1x6x6xf32>
    tpu.vector_store %arg2[%c0_10, %c0_11, %c0_12], %192 {strides = array<i32>} : memref<2x6x6xf32, #tpu.memory_space<vmem>>, vector<1x6x6xf32>,
    %193 = vector.shape_cast %165 : vector<6x6xf32> to vector<1x6x6xf32>
    %cst_13 = arith.constant dense<0.000000e+00> : vector<1xf32>
    %194 = vector.multi_reduction <add>, %193, %cst_13 [1, 2] : vector<1x6x6xf32> to vector<1xf32>
    %195 = vector.shape_cast %194 : vector<1xf32> to vector<1x1x1xf32>
    %196 = vector.extract %195[0, 0, 0] : f32 from vector<1x1x1xf32>
    %197 = arith.mulf %165, %165 : vector<6x6xf32>
    %198 = vector.shape_cast %197 : vector<6x6xf32> to vector<1x6x6xf32>
    %cst_14 = arith.constant dense<0.000000e+00> : vector<1xf32>
    %199 = vector.multi_reduction <add>, %198, %cst_14 [1, 2] : vector<1x6x6xf32> to vector<1xf32>
    %200 = vector.shape_cast %199 : vector<1xf32> to vector<1x1x1xf32>
    %201 = vector.extract %200[0, 0, 0] : f32 from vector<1x1x1xf32>
    %cst_15 = arith.constant 0.027777778 : f32
    %202 = arith.mulf %196, %cst_15 : f32
    %cst_16 = arith.constant 0.027777778 : f32
    %203 = arith.mulf %201, %cst_16 : f32
    %204 = arith.mulf %202, %202 : f32
    %205 = arith.subf %203, %204 : f32
    %cst_17 = arith.constant 9.99999974E-6 : f32
    %206 = arith.addf %205, %cst_17 : f32
    %207 = math.rsqrt %206 : f32
    %c37 = arith.constant 37 : index
    %208 = memref.load %arg1[%c37] : memref<40xf32, #tpu.memory_space<smem>>
    %209 = arith.mulf %207, %208 : f32
    %c39 = arith.constant 39 : index
    %210 = memref.load %arg1[%c39] : memref<40xf32, #tpu.memory_space<smem>>
    %211 = arith.mulf %202, %209 : f32
    %212 = arith.subf %210, %211 : f32
    %213 = vector.broadcast %209 : f32 to vector<6x6xf32>
    %214 = arith.mulf %165, %213 : vector<6x6xf32>
    %215 = vector.broadcast %212 : f32 to vector<6x6xf32>
    %216 = arith.addf %214, %215 : vector<6x6xf32>
    %c1_18 = arith.constant 1 : index
    %c0_19 = arith.constant 0 : index
    %c0_20 = arith.constant 0 : index
    %217 = vector.load %arg2[%c1_18, %c0_19, %c0_20] : memref<2x6x6xf32, #tpu.memory_space<vmem>>, vector<1x6x6xf32>
    %218 = vector.shape_cast %217 : vector<1x6x6xf32> to vector<6x6xf32>
    %219 = vector.shape_cast %216 : vector<6x6xf32> to vector<1x6x6xf32>
    tpu.vector_store %arg2[%c1_18, %c0_19, %c0_20], %219 {strides = array<i32>} : memref<2x6x6xf32, #tpu.memory_space<vmem>>, vector<1x6x6xf32>,
    return
  }
}

</mosaic_0001>

<bundles_post_ra>
// kernel: tpu_custom_call.1
= control target key start
LH: loop header
LB: loop body
LE: loop exit
PB: predicated region body
PF: predicated region fallthrough
CT: control target
= control target key end

     0   :  { %7 = vsyncpa [#allocation3], 0  ;;  %s544_s0 = inlined_call_operand.hbm [shape: f32[2,8,8], index: 0, kind: input, shape index: {}]   ;;  %s545_s1 = inlined_call_operand.vmem [shape: f32[40], index: 1, kind: input, shape index: {}]   ;;  %s546_s2 = inlined_call_operand.vmem [shape: f32[2,6,6], index: 2, kind: output, shape index: {}]  }
   0x1   :  { %8 = vsyncpa [#allocation4], 0  ;;  %s448_s9 = smov [#allocation2]   ;;  %s27_s13 = sshll.u32 %s545_s1, 4  ;;  %s28_s13 = int_to_ptr.vmem [resolvable:$true] %s27_s13 }
   0x2   :  { %s14_s10 = sshll.u32 %s448_s9, 4  ;;  %s15_s10 = int_to_ptr.vmem [resolvable:$true] %s14_s10 }
   0x3   :  { %s420_s14 = scalar_lea.vmem %s15_s10, 256  ;;  %p425_p1 = scmp.lt.s32.totalorder %s15_s10, %s15_s10 }
   0x4   :  { %p421_p0 = scmp.ne.s32.totalorder %s15_s10, %s420_s14  ;;  %p426_p2 = scmp.lt.s32.totalorder %s420_s14, %s420_s14 }
   0x6   :  { %p427_p3 = por %p426_p2, %p425_p1 }
   0x8   :  { %p428_p4 = pnand %p427_p3, %p421_p0 }
   0xa   :  { %431 = shalt.err (!%p428_p4)
}
   0xb   :  { %s449_s15 = smov 128   ;;  %s450_s16 = smov 8  }
   0xc   :  { %20 = dma.hbm_to_vmem [thread:$0]  %s544_s0, 256, %s15_s10, [#allocation3], %s449_s15, %s449_s15, %s450_s16  }
   0xd   :  { %s432_s19 = scalar_lea.vmem %s28_s13, 16  ;;  %p437_p6 = scmp.lt.s32.totalorder %s28_s13, %s28_s13 }
   0xe   :  { %p433_p5 = scmp.ne.s32.totalorder %s28_s13, %s432_s19  ;;  %p438_p7 = scmp.lt.s32.totalorder %s432_s19, %s432_s19 }
  0x10   :  { %p439_p8 = por %p438_p7, %p437_p6 }
  0x12   :  { %p440_p9 = pnand %p439_p8, %p433_p5 }
  0x14   :  { %443 = shalt.err (!%p440_p9)
}
  0x15   :  { %s451_s1 = smov [#allocation5]  }
  0x16   :  { %30 = dma.vmem_to_smem %s28_s13, 16, %s451_s1, [#allocation4]  }
  0x17   :  { %444 = dma.done.wait [#allocation3], 256  }
  0x18   :  { %445 = vsyncadd [#allocation3], 4294967040 }
  0x19   :  { %446 = dma.done.wait [#allocation4], 16  }
  0x1a   :  { %447 = vsyncadd [#allocation4], 4294967280 }
  0x1b   :  { %37 = sfence }
  0x1c   :  { %s357_s20 = sld [smem:[#allocation5 + $0x5]]  ;;  %v474_v0 = vld [vmem:[#allocation2 + $0x8] sm:$0xff]  ;;  %v38_v1 = vld [vmem:[#allocation2] sm:$0xff]  ;;  %s452_s27 = smov 127   ;;  %vm267_vm0 = vcmask 46080  }
  0x1d   :  { %s353_s21 = sld [smem:[#allocation5 + $0x1]] }
  0x1e   :  { %s362_s22 = sld [smem:[#allocation5 + $0x9]] }
  0x1f   :  { %s355_s23 = sld [smem:[#allocation5 + $0x3]] }
  0x20   :  { %s364_s0 = sld [smem:[#allocation5 + $0xb]] }
  0x21   :  { %s359_s24 = sld [smem:[#allocation5 + $0x7]] }
  0x22   :  { %v73_v2 = vstv %s357_s20  ;;  %s366_s25 = sld [smem:[#allocation5 + $0xd]] }
  0x23   :  { %v74_v3 = vmul.f32 %v73_v2, %v474_v0  ;;  %v45_v4 = vstv %s353_s21  ;;  %s368_s26 = sld [smem:[#allocation5 + $0xf]] }
  0x24   :  { %v46_v5 = vmul.f32 %v45_v4, %v38_v1  ;;  %v103_v6 = vstv %s362_s22  ;;  %s354_s28 = sld [smem:[#allocation5 + $0x2]] }
  0x25   :  { %76 = vrot.lane.b32.xlu1 %v74_v3, %s452_s27  ;;  %v104_v7 = vmul.f32 %v103_v6, %v38_v1  ;;  %v60_v8 = vstv %s355_s23  ;;  %s41_s29 = sld [smem:[#allocation5]] }
  0x26   :  { %48 = vrot.lane.b32.xlu0 %v46_v5, %s452_s27  ;;  %v61_v9 = vmul.f32 %v60_v8, %v38_v1  ;;  %v118_v10 = vstv %s364_s0  ;;  %s363_s30 = sld [smem:[#allocation5 + $0xa]] }
  0x27   :  { %v119_v11 = vmul.f32 %v118_v10, %v38_v1  ;;  %v88_v12 = vstv %s359_s24  ;;  %s361_s3 = sld [smem:[#allocation5 + $0x8]] }
  0x28   :  { %v63_v13 = vrot.slane %v61_v9, 1  ;;  %v89_v14 = vmul.f32 %v88_v12, %v474_v0  ;;  %v131_v19 = vstv %s366_s25  ;;  %s356_s4 = sld [smem:[#allocation5 + $0x4]] }
  0x29   :  { %106 = vrot.lane.b32.xlu1 %v104_v7, %s452_s27  ;;  %v121_v15 = vrot.slane %v119_v11, 1  ;;  %v146_v16 = vstv %s368_s26  ;;  %v132_v21 = vmul.f32 %v131_v19, %v474_v0  ;;  %s358_s5 = sld [smem:[#allocation5 + $0x6]] }
  0x2a   :  { %64 = vrot.lane.b32.xlu0 %v63_v13, %s452_s27  ;;  %v91_v17 = vrot.slane %v89_v14, 1  ;;  %v147_v18 = vmul.f32 %v146_v16, %v474_v0  ;;  %v53_v22 = vstv %s354_s28  ;;  %s365_s6 = sld [smem:[#allocation5 + $0xc]] }
  0x2b   :  { %v42_v23 = vstv %s41_s29  ;;  %v54_v24 = vmul.f32 %v53_v22, %v38_v1  ;;  %s367_s7 = sld [smem:[#allocation5 + $0xe]] }
  0x2c   :  { %v149_v20 = vrot.slane %v147_v18, 1  ;;  %v111_v25 = vstv %s363_s30  ;;  %v43_v26 = vmul.f32 %v42_v23, %v38_v1  ;;  %s360_s8 = sld [smem:[#allocation5 + $0x10]] }
  0x2d   :  { %122 = vrot.lane.b32.xlu1 %v121_v15, %s452_s27  ;;  %v100_v27 = vstv %s361_s3  ;;  %v112_v28 = vmul.f32 %v111_v25, %v38_v1  ;;  %v56_v30 = vrot.slane %v54_v24, 1  ;;  %s371_s9 = sld [smem:[#allocation5 + $0x13]] }
  0x2e   :  { %92 = vrot.lane.b32.xlu0 %v91_v17, %s452_s27  ;;  %v101_v32 = vmul.f32 %v100_v27, %v38_v1  ;;  %v69_v33 = vstv %s356_s4  ;;  %s373_s10 = sld [smem:[#allocation5 + $0x15]] }
  0x2f   :  { %v81_v34 = vstv %s358_s5  ;;  %v114_v36 = vrot.slane %v112_v28, 1  ;;  %v70_v38 = vmul.f32 %v69_v33, %v474_v0  ;;  %s369_s11 = sld [smem:[#allocation5 + $0x11]] }
  0x30   :  { %v82_v40 = vmul.f32 %v81_v34, %v474_v0  ;;  %v127_v41 = vstv %s365_s6  ;;  %s375_s12 = sld [smem:[#allocation5 + $0x17]] }
  0x31   :  { %150 = vrot.lane.b32.xlu1 %v149_v20, %s452_s27  ;;  %v139_v44 = vstv %s367_s7  ;;  %v128_v47 = vmul.f32 %v127_v41, %v474_v0  ;;  %s377_s13 = sld [smem:[#allocation5 + $0x19]] }
  0x32   :  { %134 = vrot.lane.b32.xlu0 %v132_v21, %s452_s27  ;;  %v84_v50 = vrot.slane %v82_v40, 1  ;;  %v140_v51 = vmul.f32 %v139_v44, %v474_v0  ;;  %v97_v58 = vstv %s360_s8  ;;  %s379_s14 = sld [smem:[#allocation5 + $0x1b]] }
  0x33   :  { %v161_v63 = vstv %s371_s9  ;;  %s372_s15 = sld [smem:[#allocation5 + $0x14]] }
  0x34   :  { %v142_v57 = vrot.slane %v140_v51, 1  ;;  %v176_v1 = vstv %s373_s10  ;;  %s370_s16 = sld [smem:[#allocation5 + $0x12]] }
  0x35   :  { %v155_v3 = vstv %s369_s11  ;;  %s374_s17 = sld [smem:[#allocation5 + $0x16]] }
  0x36   :  { %v189_v7 = vstv %s375_s12  ;;  %s376_s18 = sld [smem:[#allocation5 + $0x18]] }
  0x37   :  { %v204_v8 = vstv %s377_s13  ;;  %s383_s19 = sld [smem:[#allocation5 + $0x1f]] }
  0x38   :  { %v216_v13 = vstv %s379_s14  ;;  %s385_s1 = sld [smem:[#allocation5 + $0x21]] }
  0x39   :  { %v169_v16 = vstv %s372_s15  ;;  %s381_s20 = sld [smem:[#allocation5 + $0x1d]] }
  0x3a   :  { %v158_v17 = vstv %s370_s16  ;;  %s378_s21 = sld [smem:[#allocation5 + $0x1a]] }
  0x3b   :  { %v185_v23 = vstv %s374_s17  ;;  %s380_s22 = sld [smem:[#allocation5 + $0x1c]] }
  0x3c   :  { %v197_v24 = vstv %s376_s18  ;;  %s382_s23 = sld [smem:[#allocation5 + $0x1e]] }
  0x3d   :  { %v244_v40 = vstv %s383_s19  ;;  %s384_s0 = sld [smem:[#allocation5 + $0x20]] }
  0x3e   :  { %v259_v41 = vstv %s385_s1  ;;  %s386_s3 = sld [smem:[#allocation5 + $0x24]] }
  0x3f   :  { %v231_v44 = vstv %s381_s20  ;;  %s387_s4 = sld [smem:[#allocation5 + $0x26]] }
  0x40   :  { %s388_s18 = sld [smem:[#allocation5 + $0x25]] }
  0x41   :  { %s389_s19 = sld [smem:[#allocation5 + $0x27]] }
  0x97   :  { %v77_v29 = vpop.permute.xlu1 %76 }
  0x98   :  { %v49_v31 = vpop.permute.xlu0 %48 }
  0x99   :  { %v51_v35 = vadd.f32 %v49_v31, %v43_v26 }
  0x9b   :  { %v107_v37 = vpop.permute.xlu1 %106  ;;  %v58_v39 = vadd.f32 %v56_v30, %v51_v35 }
  0x9c   :  { %v109_v42 = vadd.f32 %v107_v37, %v101_v32  ;;  %v65_v43 = vpop.permute.xlu0 %64 }
  0x9d   :  { %v67_v45 = vadd.f32 %v65_v43, %v58_v39 }
  0x9e   :  { %v116_v46 = vadd.f32 %v114_v36, %v109_v42 }
  0x9f   :  { %v71_v48 = vadd.f32 %v70_v38, %v67_v45  ;;  %v123_v49 = vpop.permute.xlu1 %122 }
  0xa0   :  { %v125_v52 = vadd.f32 %v123_v49, %v116_v46  ;;  %v93_v53 = vpop.permute.xlu0 %92  ;;  %v224_v49 = vstv %s380_s22 }
  0xa1   :  { %v79_v54 = vadd.f32 %v77_v29, %v71_v48  ;;  %v213_v48 = vstv %s378_s21 }
  0xa2   :  { %v129_v55 = vadd.f32 %v128_v47, %v125_v52 }
  0xa3   :  { %v86_v56 = vadd.f32 %v84_v50, %v79_v54  ;;  %v151_v62 = vpop.permute.xlu1 %150 }
  0xa4   :  { %v135_v59 = vpop.permute.xlu0 %134 }
  0xa5   :  { %v95_v60 = vadd.f32 %v93_v53, %v86_v56  ;;  %v137_v61 = vadd.f32 %v135_v59, %v129_v55 }
  0xa7   :  { %v492_v2 = vadd.f32 %v97_v58, %v95_v60  ;;  %v144_v0 = vadd.f32 %v142_v57, %v137_v61  ;;  %v240_v60 = vstv %s382_s23  ;;  %v252_v61 = vstv %s384_s0 }
  0xa9   :  { %v153_v4 = vadd.f32 %v151_v62, %v144_v0  ;;  %v162_v5 = vmul.f32 %v161_v63, %v492_v2  ;;  %v177_v6 = vmul.f32 %v176_v1, %v492_v2  ;;  %v217_v15 = vmul.f32 %v216_v13, %v492_v2 }
  0xaa   :  { %v170_v18 = vmul.f32 %v169_v16, %v492_v2  ;;  %v159_v19 = vmul.f32 %v158_v17, %v492_v2  ;;  %v232_v45 = vmul.f32 %v231_v44, %v492_v2  ;;  %v214_v51 = vmul.f32 %v213_v48, %v492_v2 }
  0xab   :  { %v496_v9 = vadd.f32 %v155_v3, %v153_v4  ;;  %164 = vrot.lane.b32.xlu0 %v162_v5, %s452_s27  ;;  %v179_v10 = vrot.slane %v177_v6, 1  ;;  %v225_v52 = vmul.f32 %v224_v49, %v492_v2 }
  0xac   :  { %v172_v22 = vrot.slane %v170_v18, 1  ;;  %v234_v47 = vrot.slane %v232_v45, 1 }
  0xad   :  { %180 = vrot.lane.b32.xlu1 %v179_v10, %s452_s27  ;;  %v190_v11 = vmul.f32 %v189_v7, %v496_v9  ;;  %v205_v12 = vmul.f32 %v204_v8, %v496_v9  ;;  %v186_v28 = vmul.f32 %v185_v23, %v496_v9  ;;  %v198_v29 = vmul.f32 %v197_v24, %v496_v9 }
  0xae   :  { %v245_v42 = vmul.f32 %v244_v40, %v496_v9  ;;  %v260_v43 = vmul.f32 %v259_v41, %v496_v9  ;;  %v227_v59 = vrot.slane %v225_v52, 1  ;;  %v241_v0 = vmul.f32 %v240_v60, %v496_v9 }
  0xaf   :  { %192 = vrot.lane.b32.xlu0 %v190_v11, %s452_s27  ;;  %v207_v14 = vrot.slane %v205_v12, 1  ;;  %v200_v33 = vrot.slane %v198_v29, 1  ;;  %v253_v6 = vmul.f32 %v252_v61, %v496_v9 }
  0xb0   :  { %v262_v46 = vrot.slane %v260_v43, 1 }
  0xb1   :  { %208 = vrot.lane.b32.xlu1 %v207_v14, %s452_s27  ;;  %v255_v13 = vrot.slane %v253_v6, 1 }
  0xb3   :  { %219 = vrot.lane.b32.xlu0 %v217_v15, %s452_s27 }
 0x11d   :  { %v165_v20 = vpop.permute.xlu0 %164 }
 0x11e   :  { %v167_v21 = vadd.f32 %v165_v20, %v159_v19 }
 0x11f   :  { %v181_v26 = vpop.permute.xlu1 %180 }
 0x120   :  { %v174_v25 = vadd.f32 %v172_v22, %v167_v21 }
 0x121   :  { %v193_v31 = vpop.permute.xlu0 %192 }
 0x122   :  { %v183_v27 = vadd.f32 %v181_v26, %v174_v25 }
 0x123   :  { %v209_v35 = vpop.permute.xlu1 %208 }
 0x124   :  { %v187_v30 = vadd.f32 %v186_v28, %v183_v27 }
 0x125   :  { %v220_v50 = vpop.permute.xlu0 %219 }
 0x126   :  { %v195_v32 = vadd.f32 %v193_v31, %v187_v30  ;;  %v222_v54 = vadd.f32 %v220_v50, %v214_v51 }
 0x128   :  { %v202_v34 = vadd.f32 %v200_v33, %v195_v32  ;;  %v229_v1 = vadd.f32 %v227_v59, %v222_v54 }
 0x12a   :  { %v510_v36 = vadd.f32 %v209_v35, %v202_v34 }
 0x12c   :  { %v268_v37 = vsel %vm267_vm0, %v510_v36, 0.0  ;;  %v278_v38 = vmul.f32 %v510_v36, %v510_v36 }
 0x12d   :  { %269 = vadd.xlane.f32.xlu1 %v268_v37 }
 0x12e   :  { %v279_v39 = vsel %vm267_vm0, %v278_v38, 0.0 }
 0x12f   :  { %280 = vadd.xlane.f32.xlu0 %v279_v39 }
 0x13e   :  { %247 = vrot.lane.b32.xlu1 %v245_v42, %s452_s27 }
 0x142   :  { %263 = vrot.lane.b32.xlu1 %v262_v46, %s452_s27 }
 0x145   :  { %235 = vrot.lane.b32.xlu0 %v234_v47, %s452_s27 }
 0x1b6   :  { %v270_v53 = vpop.xlane.xlu1 %269 }
 0x1b7   :  { %v271_v55 = vrot.slane %v270_v53, 4 }
 0x1b8   :  { %v281_v56 = vpop.xlane.xlu0 %280 }
 0x1b9   :  { %v272_v57 = vadd.f32 %v271_v55, %v270_v53  ;;  %v282_v58 = vrot.slane %v281_v56, 4 }
 0x1ba   :  { %v248_v7 = vpop.permute.xlu1 %247 }
 0x1bb   :  { %v273_v62 = vrot.slane %v272_v57, 2  ;;  %v283_v63 = vadd.f32 %v282_v58, %v281_v56 }
 0x1bc   :  { %v236_v3 = vpop.permute.xlu0 %235 }
 0x1bd   :  { %v284_v4 = vrot.slane %v283_v63, 2  ;;  %v238_v5 = vadd.f32 %v236_v3, %v229_v1  ;;  %v274_v2 = vadd.f32 %v273_v62, %v272_v57 }
 0x1be   :  { %v264_v18 = vpop.permute.xlu1 %263 }
 0x1bf   :  { %v242_v8 = vadd.f32 %v241_v0, %v238_v5  ;;  %v275_v10 = vrot.slane %v274_v2, 1  ;;  %v285_v11 = vadd.f32 %v284_v4, %v283_v63 }
 0x1c1   :  { %v250_v12 = vadd.f32 %v248_v7, %v242_v8  ;;  %v276_v14 = vadd.f32 %v275_v10, %v274_v2  ;;  %v286_v15 = vrot.slane %v285_v11, 1 }
 0x1c3   :  { %v257_v16 = vadd.f32 %v255_v13, %v250_v12  ;;  %391 = vpush %v276_v14  ;;  %v287_v17 = vadd.f32 %v286_v15, %v285_v11 }
 0x1c5   :  { %v527_v19 = vadd.f32 %v264_v18, %v257_v16  ;;  %393 = vpush %v287_v17 }
 0x1c7   :  { %v307_v20 = vsel %vm267_vm0, %v527_v19, 0.0  ;;  %v317_v9 = vmul.f32 %v527_v19, %v527_v19 }
 0x1c8   :  { %308 = vadd.xlane.f32.xlu0 %v307_v20 }
 0x1c9   :  { %v318_v21 = vsel %vm267_vm0, %v317_v9, 0.0 }
 0x1ca   :  { %319 = vadd.xlane.f32.xlu1 %v318_v21 }
 0x1f4   :  { %s392_s24 = spop %391 }
 0x1f5   :  { %s289_s25 = smul.f32 0.027777778, %s392_s24 }
 0x1f6   :  { %s394_s26 = spop %393 }
 0x1f7   :  { %s291_s27 = smul.f32 %s289_s25, %s289_s25 }
 0x1f8   :  { %s290_s28 = smul.f32 0.027777778, %s394_s26 }
 0x1fa   :  { %s292_s29 = ssub.f32 %s290_s28, %s291_s27 }
 0x1fc   :  { %s293_s30 = sadd.f32 1e-05, %s292_s29 }
 0x1fe   :  { %v294_v22 = vstv %s293_s30 }
 0x1ff   :  { %408 = vrsqrt.f32 %v294_v22 }
 0x20c   :  { %v409_v23 = vpop.eup %408 }
 0x20d   :  { %395 = vpush %v409_v23 }
 0x23e   :  { %s396_s5 = spop %395 }
 0x23f   :  { %s298_s6 = smul.f32 %s396_s5, %s386_s3 }
 0x241   :  { %s300_s7 = smul.f32 %s298_s6, %s289_s25  ;;  %v302_v24 = vstv %s298_s6 }
 0x242   :  { %v303_v25 = vmul.f32 %v302_v24, %v510_v36 }
 0x243   :  { %s301_s8 = ssub.f32 %s387_s4, %s300_s7 }
 0x245   :  { %v304_v26 = vstv %s301_s8 }
 0x246   :  { %v305_v27 = vadd.f32 %v304_v26, %v303_v25 }
 0x248   :  { %306 = vst.msk [vmem:[%s546_s2] sm:$0x3f] %vm267_vm0, %v305_v27 }
 0x251   :  { %v309_v28 = vpop.xlane.xlu0 %308 }
 0x252   :  { %v310_v29 = vrot.slane %v309_v28, 4 }
 0x253   :  { %v320_v30 = vpop.xlane.xlu1 %319 }
 0x254   :  { %v311_v31 = vadd.f32 %v310_v29, %v309_v28  ;;  %v321_v32 = vrot.slane %v320_v30, 4 }
 0x256   :  { %v312_v33 = vrot.slane %v311_v31, 2  ;;  %v322_v34 = vadd.f32 %v321_v32, %v320_v30 }
 0x258   :  { %v313_v35 = vadd.f32 %v312_v33, %v311_v31  ;;  %v323_v37 = vrot.slane %v322_v34, 2 }
 0x25a   :  { %v324_v38 = vadd.f32 %v323_v37, %v322_v34  ;;  %v314_v39 = vrot.slane %v313_v35, 1 }
 0x25c   :  { %v315_v40 = vadd.f32 %v314_v39, %v313_v35  ;;  %v325_v36 = vrot.slane %v324_v38, 1 }
 0x25e   :  { %397 = vpush %v315_v40  ;;  %v326_v41 = vadd.f32 %v325_v36, %v324_v38 }
 0x260   :  { %399 = vpush %v326_v41 }
 0x28f   :  { %s398_s11 = spop %397 }
 0x290   :  { %s328_s12 = smul.f32 0.027777778, %s398_s11 }
 0x291   :  { %s400_s13 = spop %399 }
 0x292   :  { %s330_s14 = smul.f32 %s328_s12, %s328_s12 }
 0x293   :  { %s329_s15 = smul.f32 0.027777778, %s400_s13 }
 0x295   :  { %s331_s16 = ssub.f32 %s329_s15, %s330_s14 }
 0x297   :  { %s332_s17 = sadd.f32 1e-05, %s331_s16 }
 0x299   :  { %v333_v42 = vstv %s332_s17 }
 0x29a   :  { %410 = vrsqrt.f32 %v333_v42 }
 0x2a7   :  { %v411_v43 = vpop.eup %410 }
 0x2a8   :  { %401 = vpush %v411_v43 }
 0x2d9   :  { %s402_s1 = spop %401 }
 0x2da   :  { %s337_s20 = smul.f32 %s402_s1, %s388_s18 }
 0x2dc   :  { %s339_s21 = smul.f32 %s337_s20, %s328_s12  ;;  %v341_v44 = vstv %s337_s20 }
 0x2dd   :  { %v342_v45 = vmul.f32 %v341_v44, %v527_v19 }
 0x2de   :  { %s340_s22 = ssub.f32 %s389_s19, %s339_s21 }
 0x2e0   :  { %v343_v46 = vstv %s340_s22 }
 0x2e1   :  { %v344_v47 = vadd.f32 %v343_v46, %v342_v45 }
 0x2e3   :  { %390 = vst.msk [vmem:[%s546_s2 + $0x8] sm:$0x3f] %vm267_vm0, %v344_v47 }
 0x2e4   :  { %351 = vsyncpa [#allocation3], 1 }
 0x2e5   :  { %352 = vsyncpa [#allocation4], 1 }

</bundles_post_ra>
